<compile_context>
chip_gen: v5e
topology: v5e:2x2
jax: 0.10.0
libtpu: 0.0.40
codegen_flags: <defaults>
</compile_context>

<pallas_src>
import functools
import numpy as np

import jax
import jax.numpy as jnp
from jax.experimental import pallas as pl
from jax.experimental.pallas import tpu as pltpu

BN_EPS = 1e-5
EXPANSION = 4  # Bottleneck expansion


def _round_up(x, m):
    return (x + m - 1) // m * m


def _pick_tile(dim, max_tile, align):
    """Pick (tile, padded_dim) with tile | padded_dim.

    If the whole dimension fits in one tile we use the full dim (legal for
    BlockSpec regardless of (8,128) alignment)."""
    if dim <= max_tile:
        return dim, dim
    t = (max_tile // align) * align
    while t >= align:
        if dim % t == 0:
            return t, dim
        t -= align
    return align, _round_up(dim, align)


# ----------------------------------------------------------------------------
# Pallas kernels
# ----------------------------------------------------------------------------
def _mm_kernel(*args, relu, has_res):
    """out = act(A @ B + bias [+ residual]); bf16 operands, fp32 accumulator."""
    if has_res:
        a_ref, b_ref, bias_ref, r_ref, o_ref, acc_ref = args
    else:
        a_ref, b_ref, bias_ref, o_ref, acc_ref = args
        r_ref = None

    @pl.when(pl.program_id(2) == 0)
    def _():
        acc_ref[...] = jnp.zeros_like(acc_ref)

    acc_ref[...] += jnp.dot(a_ref[...], b_ref[...],
                            preferred_element_type=jnp.float32)

    @pl.when(pl.program_id(2) == pl.num_programs(2) - 1)
    def _():
        y = acc_ref[...] + bias_ref[...]
        if has_res:
            y = y + r_ref[...]
        if relu:
            y = jnp.maximum(y, 0.0)
        o_ref[...] = y.astype(o_ref.dtype)


def _conv3_kernel(x_ref, w_ref, b_ref, o_ref, acc_ref, *, taps, mout, relu):
    """Direct 3x3 stride-1 conv: 9 static row-offset slices of the flattened
    padded image, each matmul'd against its tap weight slab.  Grid:
    (batch, cout tiles, cin tiles)."""
    @pl.when(pl.program_id(2) == 0)
    def _():
        acc_ref[...] = jnp.zeros_like(acc_ref)

    for t, off in enumerate(taps):            # static python loop (9 taps)
        a = x_ref[0, pl.ds(off, mout), :]     # (Mout, tk) bf16
        acc_ref[...] += jnp.dot(a, w_ref[t],
                                preferred_element_type=jnp.float32)

    @pl.when(pl.program_id(2) == pl.num_programs(2) - 1)
    def _():
        y = acc_ref[...] + b_ref[...]
        if relu:
            y = jnp.maximum(y, 0.0)
        o_ref[0, :, :] = y.astype(o_ref.dtype)


def _max_kernel(x_ref, o_ref):
    o_ref[...] = jnp.max(x_ref[...], axis=0)


# ----------------------------------------------------------------------------
# Matmul wrapper (fused bias / ReLU / residual epilogue)
# ----------------------------------------------------------------------------
def matmul_bias(a, b, bias=None, relu=False, residual=None):
    """act((a @ b) + bias [+ residual]).  a/b cast to bf16, fp32 accumulate."""
    M, K = a.shape
    Kb, Nc = b.shape
    assert K == Kb
    a = a.astype(jnp.bfloat16)
    b = b.astype(jnp.bfloat16)

    # Tiny-K safety pad (interpolation matrices have K = 1..6).
    if K < 8:
        a = jnp.pad(a, ((0, 0), (0, 8 - K)))
        b = jnp.pad(b, ((0, 8 - K), (0, 0)))
        K = 8

    tk, Kp = _pick_tile(K, 512, 128)
    if Kp != K:
        a = jnp.pad(a, ((0, 0), (0, Kp - K)))
        b = jnp.pad(b, ((0, Kp - K), (0, 0)))
    tm, Mp = _pick_tile(M, 256, 128)
    if Mp != M:
        a = jnp.pad(a, ((0, Mp - M), (0, 0)))
    tn, Np = _pick_tile(Nc, 256, 128)
    if Np != Nc:
        b = jnp.pad(b, ((0, 0), (0, Np - Nc)))

    if bias is None:
        bias_p = jnp.zeros((1, Np), jnp.float32)
    else:
        bias_p = bias.astype(jnp.float32).reshape(1, -1)
        if bias_p.shape[1] != Np:
            bias_p = jnp.pad(bias_p, ((0, 0), (0, Np - bias_p.shape[1])))

    has_res = residual is not None
    args = [a, b, bias_p]
    in_specs = [
        pl.BlockSpec((tm, tk), lambda i, j, k: (i, k)),
        pl.BlockSpec((tk, tn), lambda i, j, k: (k, j)),
        pl.BlockSpec((1, tn), lambda i, j, k: (0, j)),
    ]
    if has_res:
        r = residual.astype(jnp.float32)
        rM, rN = r.shape
        if (rM, rN) != (Mp, Np):
            r = jnp.pad(r, ((0, Mp - rM), (0, Np - rN)))
        args.append(r)
        in_specs.append(pl.BlockSpec((tm, tn), lambda i, j, k: (i, j)))

    grid = (Mp // tm, Np // tn, Kp // tk)
    out = pl.pallas_call(
        functools.partial(_mm_kernel, relu=relu, has_res=has_res),
        out_shape=jax.ShapeDtypeStruct((Mp, Np), jnp.float32),
        grid_spec=pltpu.PrefetchScalarGridSpec(
            num_scalar_prefetch=0,
            grid=grid,
            in_specs=in_specs,
            out_specs=pl.BlockSpec((tm, tn), lambda i, j, k: (i, j)),
            scratch_shapes=[pltpu.VMEM((tm, tn), jnp.float32)],
        ),
        compiler_params=pltpu.CompilerParams(
            dimension_semantics=("parallel", "parallel", "arbitrary")),
    )(*args)
    return out[:M, :Nc]


# ----------------------------------------------------------------------------
# Convolutions
# ----------------------------------------------------------------------------
def conv1x1(x, p, stride=1, relu=False, residual=None):
    """1x1 conv as plain matmul (no im2col needed)."""
    if stride > 1:
        x = x[:, ::stride, ::stride, :]
    N, H, W, Cin = x.shape
    a = x.reshape(N * H * W, Cin)
    out = matmul_bias(a, p["wm"], p["bias"], relu=relu, residual=residual)
    cout = p["cout"]
    return out[:, :cout].reshape(N, H, W, cout)


def conv3x3_direct(x, p, dilation=1, relu=True):
    """Stride-1 3x3 conv, padding == dilation (no im2col materialization).

    The spatially padded image is flattened to (rows, Cin) with extra zero
    rows at the bottom; output pixel (h, w) on the *padded* grid is the sum
    over the 9 taps of rows shifted by the constant offset i*d*Wp + j*d.
    Garbage rows/cols (h >= H or w >= W) are discarded after the kernel."""
    N, H, W, Cin = x.shape
    d = dilation
    Hp, Wp = H + 2 * d, W + 2 * d
    eh = 2 * d + -(-2 * d // Wp)                       # extra rows >= max tap offset
    xp = jnp.pad(x.astype(jnp.bfloat16),
                 ((0, 0), (d, d + eh), (d, d), (0, 0)))
    Mfull = (Hp + eh) * Wp
    Mout = Hp * Wp
    xf = xp.reshape(N, Mfull, Cin)

    w9 = p["w9"]                                       # (9, Cin, Np) bf16
    bias = p["bias"]                                   # (1, Np) f32
    Np = w9.shape[2]
    tn = Np if Np <= 256 else (256 if Np % 256 == 0 else 128)
    if Cin <= 512:
        tk = Cin
    else:
        tk, _ = _pick_tile(Cin, 512, 128)
    assert Cin % tk == 0 and Np % tn == 0

    taps = tuple(i * d * Wp + j * d for i in range(3) for j in range(3))
    grid = (N, Np // tn, Cin // tk)
    out = pl.pallas_call(
        functools.partial(_conv3_kernel, taps=taps, mout=Mout, relu=relu),
        out_shape=jax.ShapeDtypeStruct((N, Mout, Np), jnp.float32),
        grid_spec=pltpu.PrefetchScalarGridSpec(
            num_scalar_prefetch=0,
            grid=grid,
            in_specs=[
                pl.BlockSpec((1, Mfull, tk), lambda n, co, ci: (n, 0, ci)),
                pl.BlockSpec((9, tk, tn), lambda n, co, ci: (0, ci, co)),
                pl.BlockSpec((1, tn), lambda n, co, ci: (0, co)),
            ],
            out_specs=pl.BlockSpec((1, Mout, tn), lambda n, co, ci: (n, 0, co)),
            scratch_shapes=[pltpu.VMEM((Mout, tn), jnp.float32)],
        ),
        compiler_params=pltpu.CompilerParams(
            dimension_semantics=("parallel", "parallel", "arbitrary")),
    )(xf, w9, bias)

    cout = p["cout"]
    out = out[:, :, :cout].reshape(N, Hp, Wp, cout)[:, :H, :W, :]
    return out


def conv_im2col(x, p, stride=1, padding=0, dilation=1, relu=False):
    """General conv via im2col (only used for the two stride-2 3x3 convs)."""
    N, H, W, Cin = x.shape
    k = p["k"]
    Ho = (H + 2 * padding - dilation * (k - 1) - 1) // stride + 1
    Wo = (W + 2 * padding - dilation * (k - 1) - 1) // stride + 1
    xp = jnp.pad(x.astype(jnp.bfloat16),
                 ((0, 0), (padding, padding), (padding, padding), (0, 0)))
    cols = []
    for i in range(k):
        for j in range(k):
            hs, ws = i * dilation, j * dilation
            sl = xp[:, hs:hs + (Ho - 1) * stride + 1:stride,
                    ws:ws + (Wo - 1) * stride + 1:stride, :]
            cols.append(sl)
    patches = jnp.concatenate(cols, axis=-1)
    a = patches.reshape(N * Ho * Wo, k * k * Cin)
    out = matmul_bias(a, p["wm"], p["bias"], relu=relu)
    cout = p["cout"]
    return out[:, :cout].reshape(N, Ho, Wo, cout)


def conv3x3(x, p, stride=1, dilation=1, padding=1, relu=True):
    if stride == 1 and padding == dilation and "w9" in p:
        return conv3x3_direct(x, p, dilation=dilation, relu=relu)
    return conv_im2col(x, p, stride=stride, padding=padding,
                       dilation=dilation, relu=relu)


# ----------------------------------------------------------------------------
# MaxPool (Pallas reduction over the 9 window taps, tiled over rows)
# ----------------------------------------------------------------------------
def maxpool2d(x, kernel=3, stride=2, padding=1):
    # TODO(synk): the kernel*kernel taps are still stacked in HBM (small
    # tensor, single use); a tap-strided index_map version would remove that.
    N, H, W, C = x.shape
    Ho = (H + 2 * padding - kernel) // stride + 1
    Wo = (W + 2 * padding - kernel) // stride + 1
    xp = jnp.pad(x, ((0, 0), (padding, padding), (padding, padding), (0, 0)),
                 constant_values=-jnp.inf)
    wins = []
    for i in range(kernel):
        for j in range(kernel):
            sl = xp[:, i:i + (Ho - 1) * stride + 1:stride,
                    j:j + (Wo - 1) * stride + 1:stride, :]
            wins.append(sl.reshape(N * Ho * Wo, C))
    stacked = jnp.stack(wins, axis=0)          # (KK, M, C)
    KK = kernel * kernel
    M = N * Ho * Wo
    tm, Mp = _pick_tile(M, 512, 8)
    if Mp != M:
        stacked = jnp.pad(stacked, ((0, 0), (0, Mp - M), (0, 0)),
                          constant_values=-jnp.inf)
    out = pl.pallas_call(
        _max_kernel,
        out_shape=jax.ShapeDtypeStruct((Mp, C), jnp.float32),
        grid_spec=pltpu.PrefetchScalarGridSpec(
            num_scalar_prefetch=0,
            grid=(Mp // tm,),
            in_specs=[pl.BlockSpec((KK, tm, C), lambda i: (0, i, 0))],
            out_specs=pl.BlockSpec((tm, C), lambda i: (i, 0)),
        ),
        compiler_params=pltpu.CompilerParams(
            dimension_semantics=("parallel",)),
    )(stacked)
    return out[:M].reshape(N, Ho, Wo, C)


# ----------------------------------------------------------------------------
# Adaptive-avg pool / bilinear upsample as separable interpolation matmuls
# ----------------------------------------------------------------------------
def _apply_row_matrix(x, A):
    """(N,H,W,C), A:(Ho,H) -> (N,Ho,W,C) via Pallas matmul."""
    # TODO(synk): the surrounding transposes stay in plain JAX (tiny tensors).
    N, H, W, C = x.shape
    Ho = A.shape[0]
    xr = jnp.transpose(x, (1, 0, 2, 3)).reshape(H, N * W * C)
    y = matmul_bias(A, xr)
    return jnp.transpose(y.reshape(Ho, N, W, C), (1, 0, 2, 3))


def _apply_col_matrix(x, A):
    """(N,H,W,C), A:(Wo,W) -> (N,H,Wo,C) via Pallas matmul."""
    N, H, W, C = x.shape
    Wo = A.shape[0]
    xr = jnp.transpose(x, (2, 0, 1, 3)).reshape(W, N * H * C)
    y = matmul_bias(A, xr)
    return jnp.transpose(y.reshape(Wo, N, H, C), (1, 2, 0, 3))


def _adaptive_avg_matrix(in_size, out_size):
    A = np.zeros((out_size, in_size), np.float32)
    for o in range(out_size):
        s = (o * in_size) // out_size
        e = -((-(o + 1) * in_size) // out_size)  # ceil
        A[o, s:e] = 1.0 / (e - s)
    return jnp.asarray(A)


def _bilinear_matrix(in_size, out_size):
    """align_corners=True interpolation matrix (out_size, in_size)."""
    A = np.zeros((out_size, in_size), np.float32)
    for o in range(out_size):
        if out_size == 1 or in_size == 1:
            src = 0.0
        else:
            src = o * (in_size - 1) / (out_size - 1)
        i0 = min(int(np.floor(src)), in_size - 1)
        i1 = min(i0 + 1, in_size - 1)
        w1 = src - i0
        A[o, i0] += 1.0 - w1
        A[o, i1] += w1
    return jnp.asarray(A)


def adaptive_avg_pool(x, level):
    N, H, W, C = x.shape
    x = _apply_row_matrix(x, _adaptive_avg_matrix(H, level))
    x = _apply_col_matrix(x, _adaptive_avg_matrix(W, level))
    return x


def bilinear_upsample(x, out_hw):
    Ho, Wo = out_hw
    N, H, W, C = x.shape
    x = _apply_row_matrix(x, _bilinear_matrix(H, Ho))
    x = _apply_col_matrix(x, _bilinear_matrix(W, Wo))
    return x


# ----------------------------------------------------------------------------
# Parameters (deterministic init, BN folded, pre-padded bf16 weight matrices)
# ----------------------------------------------------------------------------
def _kaiming(key, kh, kw, cin, cout):
    # kaiming_normal_(mode='fan_out', nonlinearity='relu')
    fan_out = kh * kw * cout
    std = np.sqrt(2.0 / fan_out).astype(np.float32)
    return jax.random.normal(key, (kh, kw, cin, cout), jnp.float32) * std


def _conv_params(key, cin, cout, k, fold_bn=True):
    w = _kaiming(key, k, k, cin, cout)
    if fold_bn:
        # TODO(synk): real checkpoints need per-channel (gamma,beta,mean,var)
        # folding; fresh eval-mode stats reduce to a single scalar scale.
        w = w * np.float32(1.0 / np.sqrt(1.0 + BN_EPS))
    Np = _round_up(cout, 128)
    wm = jnp.zeros((k * k * cin, Np), jnp.float32)
    wm = wm.at[:, :cout].set(w.reshape(k * k * cin, cout)).astype(jnp.bfloat16)
    p = {"wm": wm,
         "bias": jnp.zeros((1, Np), jnp.float32),
         "cout": cout, "k": k}
    if k == 3:
        w9 = jnp.zeros((9, cin, Np), jnp.float32)
        w9 = w9.at[:, :, :cout].set(w.reshape(9, cin, cout)).astype(jnp.bfloat16)
        p["w9"] = w9
    return p


def init_params(key, class_number=8, in_channel=3, layers=(1, 1, 1)):
    keys = iter(jax.random.split(key, 256))

    def conv_bn(cin, cout, k):
        return _conv_params(next(keys), cin, cout, k, fold_bn=True)

    def make_block(cin, planes, rate, padding, stride, down_in):
        blk = {"conv1": conv_bn(cin, planes, 1),
               "conv2": conv_bn(planes, planes, 3),
               "conv3": conv_bn(planes, planes * EXPANSION, 1),
               "stride": stride, "rate": rate, "padding": padding}
        if down_in is not None:
            blk["down"] = conv_bn(down_in, planes * EXPANSION, 1)
        return blk

    inplanes = 64

    def make_layer(first_inplanes, planes, blocks, rate=1, padding=1, stride=1):
        nonlocal inplanes
        need_down = (stride != 1) or (inplanes != planes * EXPANSION)
        # TODO(synk): the reference builds downsample from `self.inplanes`,
        # which mismatches the real input channels for layer1 (64 vs 128); we
        # use the actual input channel count so shapes are consistent.
        down_in = first_inplanes if need_down else None
        layer = [make_block(first_inplanes, planes, rate, padding, stride,
                            down_in)]
        inplanes = planes * EXPANSION
        for _ in range(1, blocks):
            layer.append(make_block(inplanes, planes, rate, padding, 1, None))
        return layer

    params = {
        "conv1_1": conv_bn(in_channel, 64, 3),
        "conv1_2": conv_bn(64, 64, 3),
        "conv1_3": conv_bn(64, 128, 3),
    }
    params["layer1"] = make_layer(128, 64, layers[0])
    params["layer2"] = make_layer(256, 128, layers[1], stride=2)
    params["layer3"] = make_layer(512, 256, layers[2], rate=2, padding=2)
    params["layer4"] = make_layer(1024, 512, layers[2], rate=4, padding=4)
    params["spp"] = {name: conv_bn(2048, 512, 1)
                     for name in ("spp1", "spp2", "spp3", "spp6")}
    params["conv5_4"] = conv_bn(2048 + 512 * 4, 512, 3)
    params["conv6"] = _conv_params(next(keys), 512, class_number, 1,
                                   fold_bn=False)
    return params


# ----------------------------------------------------------------------------
# Forward pass
# ----------------------------------------------------------------------------
def bottleneck_forward(x, blk):
    out = conv1x1(x, blk["conv1"], relu=True)
    out = conv3x3(out, blk["conv2"], stride=blk["stride"],
                  dilation=blk["rate"], padding=blk["padding"], relu=True)
    if "down" in blk:
        identity = conv1x1(x, blk["down"], stride=blk["stride"], relu=False)
    else:
        identity = x
    N, H, W, _ = out.shape
    res2d = identity.reshape(N * H * W, identity.shape[-1])
    # Residual add + ReLU fused into the conv3 matmul epilogue.
    out = conv1x1(out, blk["conv3"], relu=True, residual=res2d)
    return out


def pspnet_forward(params, x_nchw):
    x = jnp.transpose(x_nchw.astype(jnp.float32), (0, 2, 3, 1))  # NCHW -> NHWC
    size = x.shape[1:3]

    x = conv3x3(x, params["conv1_1"], stride=2, relu=True)
    x = conv3x3(x, params["conv1_2"], relu=True)
    x = conv3x3(x, params["conv1_3"], relu=True)
    x = maxpool2d(x, kernel=3, stride=2, padding=1)

    for name in ("layer1", "layer2", "layer3", "layer4"):
        for blk in params[name]:
            x = bottleneck_forward(x, blk)

    # SPP (pyramid pooling): torch.cat dim=1 == channel axis (last in NHWC)
    feats = [x]
    for level, name in ((1, "spp1"), (2, "spp2"), (3, "spp3"), (6, "spp6")):
        p = params["spp"][name]
        y = adaptive_avg_pool(x, level)
        y = conv1x1(y, p, relu=True)
        y = bilinear_upsample(y, x.shape[1:3])
        feats.append(y)
    x = jnp.concatenate(feats, axis=-1)

    x = conv3x3(x, params["conv5_4"], relu=True)
    # Dropout2d -> identity (inference mode).
    x = conv1x1(x, params["conv6"], relu=False)
    x = bilinear_upsample(x, size)
    return jnp.transpose(x, (0, 3, 1, 2))  # back to NCHW


# ----------------------------------------------------------------------------
if __name__ == "__main__":
    key = jax.random.PRNGKey(0)
    pkey, xkey = jax.random.split(key)

    CLASS_NUMBER = 8
    params = init_params(pkey, class_number=CLASS_NUMBER, in_channel=3,
                         layers=(1, 1, 1))

    x = jax.random.normal(xkey, (2, 3, 32, 32), jnp.float32)  # NCHW like PyTorch
    out = pspnet_forward(params, x)
    out = jax.block_until_ready(out)

    assert out.shape == (2, CLASS_NUMBER, 32, 32), out.shape
    assert out.dtype == jnp.float32
    assert bool(jnp.all(jnp.isfinite(out)))
    print("KERNEL_OK")
</pallas_src>

<mosaic_0001>
module attributes {stable_mosaic.version = 11 : i64} {
  func.func @_mm_kernel(%arg0: i32, %arg1: i32, %arg2: i32, %arg3: memref<256x27xbf16, #tpu.memory_space<vmem>>, %arg4: memref<27x128xbf16, #tpu.memory_space<vmem>>, %arg5: memref<1x128xf32, #tpu.memory_space<vmem>>, %arg6: memref<256x128xf32, #tpu.memory_space<vmem>>, %arg7: memref<256x128xf32, #tpu.memory_space<vmem>>) attributes {dimension_semantics = [#tpu.dimension_semantics<parallel>, #tpu.dimension_semantics<parallel>, #tpu.dimension_semantics<arbitrary>], iteration_bounds = array<i64: 2, 1, 1>, scalar_prefetch = 0 : i64, scratch_operands = 1 : i64, tpu.core_type = #tpu.core_type<tc>, window_params = [{transform_indices = @transform_0, window_bounds = array<i64: 256, 27>}, {transform_indices = @transform_1, window_bounds = array<i64: 27, 128>}, {transform_indices = @transform_2, window_bounds = array<i64: 1, 128>}, {transform_indices = @transform_3, window_bounds = array<i64: 256, 128>}]} {
    %c0_i32 = arith.constant 0 : i32
    %0 = arith.cmpi eq, %arg2, %c0_i32 : i32
    %1 = arith.extui %0 : i1 to i32
    %c0_i32_0 = arith.constant 0 : i32
    %2 = arith.cmpi ne, %1, %c0_i32_0 : i32
    scf.if %2 {
      %cst_10 = arith.constant 0.000000e+00 : f32
      %12 = vector.broadcast %cst_10 : f32 to vector<256x128xf32>
      %c0_11 = arith.constant 0 : index
      %c0_12 = arith.constant 0 : index
      %13 = vector.load %arg7[%c0_11, %c0_12] : memref<256x128xf32, #tpu.memory_space<vmem>>, vector<256x128xf32>
      tpu.vector_store %arg7[%c0_11, %c0_12], %12 {strides = array<i32>} : memref<256x128xf32, #tpu.memory_space<vmem>>, vector<256x128xf32>,
    } else {
    }
    %c0 = arith.constant 0 : index
    %c0_1 = arith.constant 0 : index
    %3 = vector.load %arg7[%c0, %c0_1] : memref<256x128xf32, #tpu.memory_space<vmem>>, vector<256x128xf32>
    %c0_2 = arith.constant 0 : index
    %c0_3 = arith.constant 0 : index
    %4 = vector.load %arg3[%c0_2, %c0_3] : memref<256x27xbf16, #tpu.memory_space<vmem>>, vector<256x27xbf16>
    %c0_4 = arith.constant 0 : index
    %c0_5 = arith.constant 0 : index
    %5 = vector.load %arg4[%c0_4, %c0_5] : memref<27x128xbf16, #tpu.memory_space<vmem>>, vector<27x128xbf16>
    %cst = arith.constant dense<0.000000e+00> : vector<256x128xf32>
    %6 = tpu.matmul %4, %5, %cst {dimension_numbers = #tpu.dot_dimension_numbers<[1], [0], [0], [1], [0, 0, 1, 1], [], []>} : vector<256x27xbf16>, vector<27x128xbf16>, vector<256x128xf32> -> vector<256x128xf32>
    %7 = arith.addf %3, %6 : vector<256x128xf32>
    %c0_6 = arith.constant 0 : index
    %c0_7 = arith.constant 0 : index
    %8 = vector.load %arg7[%c0_6, %c0_7] : memref<256x128xf32, #tpu.memory_space<vmem>>, vector<256x128xf32>
    tpu.vector_store %arg7[%c0_6, %c0_7], %7 {strides = array<i32>} : memref<256x128xf32, #tpu.memory_space<vmem>>, vector<256x128xf32>,
    %c0_i32_8 = arith.constant 0 : i32
    %9 = arith.cmpi eq, %arg2, %c0_i32_8 : i32
    %10 = arith.extui %9 : i1 to i32
    %c0_i32_9 = arith.constant 0 : i32
    %11 = arith.cmpi ne, %10, %c0_i32_9 : i32
    scf.if %11 {
      %c0_10 = arith.constant 0 : index
      %c0_11 = arith.constant 0 : index
      %12 = vector.load %arg7[%c0_10, %c0_11] : memref<256x128xf32, #tpu.memory_space<vmem>>, vector<256x128xf32>
      %c0_12 = arith.constant 0 : index
      %c0_13 = arith.constant 0 : index
      %13 = vector.load %arg5[%c0_12, %c0_13] : memref<1x128xf32, #tpu.memory_space<vmem>>, vector<1x128xf32>
      %14 = vector.broadcast %13 : vector<1x128xf32> to vector<256x128xf32>
      %15 = arith.addf %12, %14 : vector<256x128xf32>
      %cst_14 = arith.constant 0.000000e+00 : f32
      %16 = vector.broadcast %cst_14 : f32 to vector<256x128xf32>
      %17 = arith.maximumf %15, %16 : vector<256x128xf32>
      %c0_15 = arith.constant 0 : index
      %c0_16 = arith.constant 0 : index
      %18 = vector.load %arg6[%c0_15, %c0_16] : memref<256x128xf32, #tpu.memory_space<vmem>>, vector<256x128xf32>
      tpu.vector_store %arg6[%c0_15, %c0_16], %17 {strides = array<i32>} : memref<256x128xf32, #tpu.memory_space<vmem>>, vector<256x128xf32>,
    } else {
    }
    return
  }
  func.func @transform_0(%arg0: i32, %arg1: i32, %arg2: i32) -> (i32, i32) {
    %c0_i32 = arith.constant 0 : i32
    return %arg0, %arg2 : i32, i32
  }
  func.func @transform_1(%arg0: i32, %arg1: i32, %arg2: i32) -> (i32, i32) {
    %c0_i32 = arith.constant 0 : i32
    return %arg2, %arg1 : i32, i32
  }
  func.func @transform_2(%arg0: i32, %arg1: i32, %arg2: i32) -> (i32, i32) {
    %c0_i32 = arith.constant 0 : i32
    %c0_i32_0 = arith.constant 0 : i32
    return %c0_i32, %arg1 : i32, i32
  }
  func.func @transform_3(%arg0: i32, %arg1: i32, %arg2: i32) -> (i32, i32) {
    %c0_i32 = arith.constant 0 : i32
    return %arg0, %arg1 : i32, i32
  }
}

</mosaic_0001>

<bundles_post_ra>
// kernel: tpu_custom_call.1
= control target key start
LH: loop header
LB: loop body
LE: loop exit
PB: predicated region body
PF: predicated region fallthrough
CT: control target
= control target key end

     0   :  { %8 = vsyncpa [#allocation4], 0  ;;  %s1421_s0 = inlined_call_operand.vmem [shape: bf16[512,27], index: 0, kind: input, shape index: {}]   ;;  %s1422_s1 = inlined_call_operand.vmem [shape: bf16[27,128], index: 1, kind: input, shape index: {}]   ;;  %s1423_s2 = inlined_call_operand.vmem [shape: f32[1,128], index: 2, kind: input, shape index: {}]   ;;  %s1424_s3 = inlined_call_operand.hbm [shape: f32[512,128], index: 3, kind: output, shape index: {}]  }
   0x1   :  { %10 = vsyncpa [#allocation4 + $0x1], 0  ;;  %s1206_s12 = smov 0   ;;  %s1208_s13 = smov 0  }
   0x2   :  { %s1210_s14 = smov 0   ;;  %s1212_s15 = smov 0  }
   0x3   :  { %s1214_s16 = smov 0   ;;  %s1216_s17 = smov 0  }
   0x4 LB: > { %s916_s18 = sadd.s32 4294967295, %s1181_s17   ;;  %s917_s19 = sadd.s32 4294967294, %s1181_s17   ;;  %s1181_s17 = sphi %s1216_s17, %s16_s17   ;;  %s1177_s16 = sphi %s1214_s16, %s1431_s16   ;;  %s1173_s15 = sphi %s1212_s15, %s1430_s15   ;;  %s1169_s14 = sphi %s1210_s14, %s1429_s14   ;;  %s1165_s13 = sphi %s1208_s13, %s1428_s13   ;;  %s1161_s12 = sphi %s1206_s12, %s1427_s12  }
   0x5   : > { %s35_s20 = sadd.s32 1, %s1177_s16  ;;  %s126_s21 = sadd.s32 1, %s1169_s14 }
   0x6   : > { %p37_p0 = scmp.ge.s32.totalorder %s35_s20, 2  ;;  %p136_p1 = scmp.ne.s32.totalorder %s1169_s14, %s1165_s13 }
   0x7   : > { %p137_p2 = scmp.eq.s32.totalorder %s916_s18, 1  ;;  %p142_p3 = scmp.ne.s32.totalorder %s1165_s13, %s1161_s12 }
   0x8   : > { %s1433_s20 = smov (%p37_p0, %s35_s20), 0  ;;  %p143_p5 = scmp.eq.s32.totalorder %s917_s19, 1 }
   0x9   : > { %p1246_p4 = por %p137_p2, %p136_p1  ;;  %s121_s23 = ssub.s32 %s1177_s16, %s1433_s20 }
   0xa   : > { %p922_p6 = scmp.ge.s32.totalorder %s1181_s17, 1  ;;  %p124_p7 = scmp.eq.s32.totalorder %s121_s23, 0 }
   0xb   : > { %p1253_p8 = por %p143_p5, %p142_p3  ;;  %p191_p9 = scmp.lt.s32.totalorder %s1181_s17, 3 }
   0xc   : > { %s1259_s25 = scalar_select %p124_p7, %s1169_s14, %s126_s21  }
   0xd   : > { %p192_p10 = pnand %p922_p6, %p191_p9 }
   0xe   : > { %s924_s30 = sshll.u32 (!%p192_p10), %s1173_s15, 5  ;;  %s226_s10 = sand.u32 (!%p192_p10), 1, %s1165_s13  }
   0xf   : > { %195 = sbr.rel (%p192_p10) target bundleno = 231 (0xe7), region = 32  ;;  %p230_p11 = scmp.lt.s32.totalorder (!%p192_p10), %s924_s30, 63 }
  0x10   : > { %s923_s19 = sshll.u32 (!%p192_p10), %s226_s10, 8  ;;  %s1037_s23 = sshll.u32 (!%p192_p10), %s1173_s15, 8 }
  0x11   : > { %s1318_s21 = scalar_lea.vmem (!%p192_p10), [#allocation3], %s923_s19  ;;  %s804_s28 = scalar_lea.hbm (!%p192_p10), %s1424_s3, %s1037_s23 }
  0x12   : > { %s805_s29 = sshll.u32 (!%p192_p10), %s1318_s21, 4  ;;  %s807_s15 = sshll.u32 (!%p192_p10), %s804_s28, 4  ;;  %s806_s29 = int_to_ptr.vmem [resolvable:$true] %s805_s29  ;;  %s808_s15 = int_to_ptr.hbm [resolvable:$true] %s807_s15 }
  0x13   : > { %s1117_s4 = sshra.s32 (!%p192_p10), %s808_s15, 4  ;;  %s1123_s8 = scalar_lea.hbm (!%p192_p10), %s1424_s3, 512  ;;  %s1118_s4 = int_to_ptr.hbm [resolvable:$true] %s1117_s4 }
  0x14   : > { %v996_v0 = vld [vmem:[%s1422_s1 + $0x8] sm:$0xf]  ;;  %v1036_v1 = vld [vmem:[%s1422_s1 + $0x8] sm:$0x30]  ;;  %vm496_vm0 = vcmask 1044480   ;;  %vm497_vm1 = vcmask 1045504   ;;  %p1124_p1 = scmp.lt.s32.totalorder %s1118_s4, %s1424_s3 }
  0x15   : > { %v997_v2 = vor.u32 %v1036_v1, %v996_v0  ;;  %v1183_v3 = vmov 65535   ;;  %s1435_s30 = smov (!%p230_p11, %s924_s30), 63  ;;  %v1035_v7 = vld [vmem:[%s1422_s1] sm:$0xff]  ;;  %vm447_vm2 = vcmask 220160   ;;  %s1119_s5 = scalar_lea.hbm %s1118_s4, 256 }
  0x16   : > { %v498_v4 = vsel %vm496_vm0, 4294967295, %v1183_v3  ;;  %s925_s6 = sshll.u32 %s1435_s30, 2  ;;  %v1312_v24 = vld [vmem:[%s1423_s2] ss:$0 sm:$0xff]  ;;  %s792_s30 = scalar_lea.sflag [#allocation4], %s226_s10 }
  0x17   : > { %v499_v5 = vsel %vm497_vm1, %v498_v4, 0  ;;  %s1274_s9 = scalar_lea.vmem %s1421_s0, %s925_s6  ;;  %p1120_p12 = scmp.ne.s32.totalorder %s1118_s4, %s1119_s5 }
  0x18   : > { %v501_v6 = vand.u32 %v997_v2, %v499_v5  ;;  %v1019_v8 = vld [vmem:[%s1274_s9] sm:$0xff]  ;;  %v1020_v12 = vld [vmem:[%s1274_s9 + $0x8] sm:$0xff]  ;;  %v1021_v16 = vld [vmem:[%s1274_s9 + $0x10] sm:$0xff]  ;;  %p1125_p2 = scmp.lt.s32.totalorder %s1123_s8, %s1119_s5 }
  0x19   : > { %v1023_v9 = vld [vmem:[%s1274_s9 + $0x20] sm:$0xff]  ;;  %v1024_v13 = vld [vmem:[%s1274_s9 + $0x28] sm:$0xff]  ;;  %v1025_v17 = vld [vmem:[%s1274_s9 + $0x30] sm:$0xff]  ;;  %p1121_p13 = pnand %p1120_p12, %p1246_p4 }
  0x1a   : > { %509 = vmatpush.bf16.msra.mxu0 %v501_v6  ;;  %1038 = vmatpush.bf16.msra.mxu1 %v501_v6  ;;  %v1027_v10 = vld [vmem:[%s1274_s9 + $0x40] sm:$0xff]  ;;  %v1028_v14 = vld [vmem:[%s1274_s9 + $0x48] sm:$0xff]  ;;  %v1029_v18 = vld [vmem:[%s1274_s9 + $0x50] sm:$0xff]  ;;  %p1126_p3 = por %p1125_p2, %p1124_p1 }
  0x1b   : > { %1039 = vmatpush.bf16.msra.mxu2 %v501_v6  ;;  %1040 = vmatpush.bf16.msra.mxu3 %v501_v6  ;;  %v1031_v11 = vld [vmem:[%s1274_s9 + $0x60] sm:$0xff]  ;;  %v1032_v15 = vld [vmem:[%s1274_s9 + $0x68] sm:$0xff]  ;;  %v1033_v19 = vld [vmem:[%s1274_s9 + $0x70] sm:$0xff]  ;;  %p1122_p0 = pneg %p1121_p13 }
  0x1c   : > { %v1022_v20 = vld [vmem:[%s1274_s9 + $0x18] sm:$0xff] }
  0x1d   : > { %v1026_v21 = vld [vmem:[%s1274_s9 + $0x38] sm:$0xff]  ;;  %p1127_p5 = pnand %p1126_p3, %p1122_p0 }
  0x1e   : > { %510 = vmatpush.bf16.msra.mxu0 %v1035_v7  ;;  %1041 = vmatpush.bf16.msra.mxu1 %v1035_v7  ;;  %v1030_v22 = vld [vmem:[%s1274_s9 + $0x58] sm:$0xff] }
  0x1f   : > { %1042 = vmatpush.bf16.msra.mxu2 %v1035_v7  ;;  %1043 = vmatpush.bf16.msra.mxu3 %v1035_v7  ;;  %v1034_v23 = vld [vmem:[%s1274_s9 + $0x78] sm:$0xff] }
  0x21   : > { %998 = vmatmul.msk.bf16.vlgmr.msra.gmra.mxu0 %vm447_vm2, %v1019_v8  ;;  %1002 = vmatmul.msk.bf16.vlgmr.msra.gmra.mxu1 %vm447_vm2, %v1023_v9 }
  0x22   : > { %1006 = vmatmul.msk.bf16.vlgmr.msra.gmra.mxu2 %vm447_vm2, %v1027_v10  ;;  %1010 = vmatmul.msk.bf16.vlgmr.msra.gmra.mxu3 %vm447_vm2, %v1031_v11 }
  0x31   : > { %999 = vmatmul.msk.bf16.gmra.mxu0 %vm447_vm2, %v1020_v12  ;;  %1003 = vmatmul.msk.bf16.gmra.mxu1 %vm447_vm2, %v1024_v13 }
  0x32   : > { %1007 = vmatmul.msk.bf16.gmra.mxu2 %vm447_vm2, %v1028_v14  ;;  %1011 = vmatmul.msk.bf16.gmra.mxu3 %vm447_vm2, %v1032_v15 }
  0x41   : > { %1000 = vmatmul.msk.bf16.gmra.mxu0 %vm447_vm2, %v1021_v16  ;;  %1004 = vmatmul.msk.bf16.gmra.mxu1 %vm447_vm2, %v1025_v17 }
  0x42   : > { %1008 = vmatmul.msk.bf16.gmra.mxu2 %vm447_vm2, %v1029_v18  ;;  %1012 = vmatmul.msk.bf16.gmra.mxu3 %vm447_vm2, %v1033_v19 }
  0x51   : > { %1001 = vmatmul.msk.bf16.gmra.mxu0 %vm447_vm2, %v1022_v20  ;;  %1005 = vmatmul.msk.bf16.gmra.mxu1 %vm447_vm2, %v1026_v21 }
  0x52   : > { %1009 = vmatmul.msk.bf16.gmra.mxu2 %vm447_vm2, %v1030_v22  ;;  %1013 = vmatmul.msk.bf16.gmra.mxu3 %vm447_vm2, %v1034_v23 }
  0x9e   : > { %v512_v25 = vpop.f32.mrf.mxu0  ;;  %v532_v26 = vpop.f32.mrf.mxu1 }
  0x9f   : > { %v695_v27 = vadd.f32 %v1312_v24, %v512_v25  ;;  %v703_v28 = vadd.f32 %v1312_v24, %v532_v26 }
  0xa1   : > { %v727_v29 = vmax.f32 %v695_v27, 0.0  ;;  %v735_v30 = vmax.f32 %v703_v28, 0.0 }
  0xa3   : > { %759 = vst [vmem:[%s1318_s21] sm:$0xff] %v727_v29 }
  0xa4   : > { %767 = vst [vmem:[%s1318_s21 + $0x40] sm:$0xff] %v735_v30 }
  0xa5   : > { %v552_v31 = vpop.f32.mrf.mxu2  ;;  %v572_v32 = vpop.f32.mrf.mxu3 }
  0xa6   : > { %v711_v33 = vadd.f32 %v1312_v24, %v552_v31  ;;  %v719_v34 = vadd.f32 %v1312_v24, %v572_v32  ;;  %v514_v35 = vpop.f32.mrf.mxu0  ;;  %v534_v36 = vpop.f32.mrf.mxu1 }
  0xa7   : > { %v696_v37 = vadd.f32 %v1312_v24, %v514_v35  ;;  %v704_v38 = vadd.f32 %v1312_v24, %v534_v36 }
  0xa8   : > { %v743_v39 = vmax.f32 %v711_v33, 0.0  ;;  %v751_v40 = vmax.f32 %v719_v34, 0.0 }
  0xa9   : > { %v728_v41 = vmax.f32 %v696_v37, 0.0  ;;  %v736_v42 = vmax.f32 %v704_v38, 0.0 }
  0xaa   : > { %775 = vst [vmem:[%s1318_s21 + $0x80] sm:$0xff] %v743_v39 }
  0xab   : > { %783 = vst [vmem:[%s1318_s21 + $0xc0] sm:$0xff] %v751_v40 }
  0xac   : > { %760 = vst [vmem:[%s1318_s21 + $0x8] sm:$0xff] %v728_v41 }
  0xad   : > { %768 = vst [vmem:[%s1318_s21 + $0x48] sm:$0xff] %v736_v42  ;;  %v554_v43 = vpop.f32.mrf.mxu2  ;;  %v574_v44 = vpop.f32.mrf.mxu3 }
  0xae   : > { %v712_v45 = vadd.f32 %v1312_v24, %v554_v43  ;;  %v720_v46 = vadd.f32 %v1312_v24, %v574_v44  ;;  %v517_v47 = vpop.f32.mrf.mxu0  ;;  %v537_v48 = vpop.f32.mrf.mxu1 }
  0xaf   : > { %v697_v49 = vadd.f32 %v1312_v24, %v517_v47  ;;  %v705_v50 = vadd.f32 %v1312_v24, %v537_v48 }
  0xb0   : > { %v744_v51 = vmax.f32 %v712_v45, 0.0  ;;  %v752_v52 = vmax.f32 %v720_v46, 0.0 }
  0xb1   : > { %v729_v53 = vmax.f32 %v697_v49, 0.0  ;;  %v737_v54 = vmax.f32 %v705_v50, 0.0 }
  0xb2   : > { %776 = vst [vmem:[%s1318_s21 + $0x88] sm:$0xff] %v744_v51 }
  0xb3   : > { %784 = vst [vmem:[%s1318_s21 + $0xc8] sm:$0xff] %v752_v52 }
  0xb4   : > { %761 = vst [vmem:[%s1318_s21 + $0x10] sm:$0xff] %v729_v53 }
  0xb5   : > { %769 = vst [vmem:[%s1318_s21 + $0x50] sm:$0xff] %v737_v54  ;;  %v557_v55 = vpop.f32.mrf.mxu2  ;;  %v577_v56 = vpop.f32.mrf.mxu3 }
  0xb6   : > { %v713_v57 = vadd.f32 %v1312_v24, %v557_v55  ;;  %v721_v58 = vadd.f32 %v1312_v24, %v577_v56  ;;  %v519_v59 = vpop.f32.mrf.mxu0  ;;  %v539_v60 = vpop.f32.mrf.mxu1 }
  0xb7   : > { %v698_v61 = vadd.f32 %v1312_v24, %v519_v59  ;;  %v706_v62 = vadd.f32 %v1312_v24, %v539_v60 }
  0xb8   : > { %v745_v63 = vmax.f32 %v713_v57, 0.0  ;;  %v753_v0 = vmax.f32 %v721_v58, 0.0 }
  0xb9   : > { %v730_v1 = vmax.f32 %v698_v61, 0.0  ;;  %v738_v2 = vmax.f32 %v706_v62, 0.0 }
  0xba   : > { %777 = vst [vmem:[%s1318_s21 + $0x90] sm:$0xff] %v745_v63 }
  0xbb   : > { %785 = vst [vmem:[%s1318_s21 + $0xd0] sm:$0xff] %v753_v0 }
  0xbc   : > { %762 = vst [vmem:[%s1318_s21 + $0x18] sm:$0xff] %v730_v1 }
  0xbd   : > { %770 = vst [vmem:[%s1318_s21 + $0x58] sm:$0xff] %v738_v2  ;;  %v559_v3 = vpop.f32.mrf.mxu2  ;;  %v579_v4 = vpop.f32.mrf.mxu3 }
  0xbe   : > { %v714_v5 = vadd.f32 %v1312_v24, %v559_v3  ;;  %v722_v6 = vadd.f32 %v1312_v24, %v579_v4  ;;  %v522_v7 = vpop.f32.mrf.mxu0  ;;  %v542_v8 = vpop.f32.mrf.mxu1 }
  0xbf   : > { %v699_v9 = vadd.f32 %v1312_v24, %v522_v7  ;;  %v707_v10 = vadd.f32 %v1312_v24, %v542_v8 }
  0xc0   : > { %v746_v11 = vmax.f32 %v714_v5, 0.0  ;;  %v754_v12 = vmax.f32 %v722_v6, 0.0 }
  0xc1   : > { %v731_v13 = vmax.f32 %v699_v9, 0.0  ;;  %v739_v14 = vmax.f32 %v707_v10, 0.0 }
  0xc2   : > { %778 = vst [vmem:[%s1318_s21 + $0x98] sm:$0xff] %v746_v11 }
  0xc3   : > { %786 = vst [vmem:[%s1318_s21 + $0xd8] sm:$0xff] %v754_v12 }
  0xc4   : > { %763 = vst [vmem:[%s1318_s21 + $0x20] sm:$0xff] %v731_v13 }
  0xc5   : > { %771 = vst [vmem:[%s1318_s21 + $0x60] sm:$0xff] %v739_v14  ;;  %v562_v15 = vpop.f32.mrf.mxu2  ;;  %v582_v16 = vpop.f32.mrf.mxu3 }
  0xc6   : > { %v715_v17 = vadd.f32 %v1312_v24, %v562_v15  ;;  %v723_v18 = vadd.f32 %v1312_v24, %v582_v16  ;;  %v524_v19 = vpop.f32.mrf.mxu0  ;;  %v544_v20 = vpop.f32.mrf.mxu1 }
  0xc7   : > { %v700_v21 = vadd.f32 %v1312_v24, %v524_v19  ;;  %v708_v22 = vadd.f32 %v1312_v24, %v544_v20 }
  0xc8   : > { %v747_v23 = vmax.f32 %v715_v17, 0.0  ;;  %v755_v25 = vmax.f32 %v723_v18, 0.0 }
  0xc9   : > { %v732_v26 = vmax.f32 %v700_v21, 0.0  ;;  %v740_v27 = vmax.f32 %v708_v22, 0.0 }
  0xca   : > { %779 = vst [vmem:[%s1318_s21 + $0xa0] sm:$0xff] %v747_v23 }
  0xcb   : > { %787 = vst [vmem:[%s1318_s21 + $0xe0] sm:$0xff] %v755_v25 }
  0xcc   : > { %764 = vst [vmem:[%s1318_s21 + $0x28] sm:$0xff] %v732_v26 }
  0xcd   : > { %772 = vst [vmem:[%s1318_s21 + $0x68] sm:$0xff] %v740_v27  ;;  %v564_v28 = vpop.f32.mrf.mxu2  ;;  %v584_v29 = vpop.f32.mrf.mxu3 }
  0xce   : > { %v716_v30 = vadd.f32 %v1312_v24, %v564_v28  ;;  %v724_v31 = vadd.f32 %v1312_v24, %v584_v29  ;;  %v527_v32 = vpop.f32.mrf.mxu0  ;;  %v547_v33 = vpop.f32.mrf.mxu1 }
  0xcf   : > { %v701_v34 = vadd.f32 %v1312_v24, %v527_v32  ;;  %v709_v35 = vadd.f32 %v1312_v24, %v547_v33 }
  0xd0   : > { %v748_v36 = vmax.f32 %v716_v30, 0.0  ;;  %v756_v37 = vmax.f32 %v724_v31, 0.0 }
  0xd1   : > { %v733_v38 = vmax.f32 %v701_v34, 0.0  ;;  %v741_v39 = vmax.f32 %v709_v35, 0.0 }
  0xd2   : > { %780 = vst [vmem:[%s1318_s21 + $0xa8] sm:$0xff] %v748_v36 }
  0xd3   : > { %788 = vst [vmem:[%s1318_s21 + $0xe8] sm:$0xff] %v756_v37 }
  0xd4   : > { %765 = vst [vmem:[%s1318_s21 + $0x30] sm:$0xff] %v733_v38 }
  0xd5   : > { %773 = vst [vmem:[%s1318_s21 + $0x70] sm:$0xff] %v741_v39  ;;  %v567_v40 = vpop.f32.mrf.mxu2  ;;  %v587_v41 = vpop.f32.mrf.mxu3 }
  0xd6   : > { %v717_v42 = vadd.f32 %v1312_v24, %v567_v40  ;;  %v725_v43 = vadd.f32 %v1312_v24, %v587_v41  ;;  %v529_v44 = vpop.f32.mrf.mxu0  ;;  %v549_v45 = vpop.f32.mrf.mxu1 }
  0xd7   : > { %v702_v46 = vadd.f32 %v1312_v24, %v529_v44  ;;  %v710_v47 = vadd.f32 %v1312_v24, %v549_v45 }
  0xd8   : > { %v749_v48 = vmax.f32 %v717_v42, 0.0  ;;  %v757_v49 = vmax.f32 %v725_v43, 0.0 }
  0xd9   : > { %v734_v50 = vmax.f32 %v702_v46, 0.0  ;;  %v742_v51 = vmax.f32 %v710_v47, 0.0 }
  0xda   : > { %781 = vst [vmem:[%s1318_s21 + $0xb0] sm:$0xff] %v749_v48 }
  0xdb   : > { %789 = vst [vmem:[%s1318_s21 + $0xf0] sm:$0xff] %v757_v49 }
  0xdc   : > { %766 = vst [vmem:[%s1318_s21 + $0x38] sm:$0xff] %v734_v50 }
  0xdd   : > { %774 = vst [vmem:[%s1318_s21 + $0x78] sm:$0xff] %v742_v51  ;;  %v569_v52 = vpop.f32.mrf.mxu2  ;;  %v589_v53 = vpop.f32.mrf.mxu3 }
  0xde   : > { %v718_v54 = vadd.f32 %v1312_v24, %v569_v52  ;;  %v726_v55 = vadd.f32 %v1312_v24, %v589_v53 }
  0xe0   : > { %v750_v56 = vmax.f32 %v718_v54, 0.0  ;;  %v758_v57 = vmax.f32 %v726_v55, 0.0 }
  0xe2   : > { %782 = vst [vmem:[%s1318_s21 + $0xb8] sm:$0xff] %v750_v56 }
  0xe3   : > { %790 = vst [vmem:[%s1318_s21 + $0xf8] sm:$0xff] %v758_v57 }
  0xe4   : > { %1130 = shalt.err (!%p1127_p5)
}
  0xe5   : > { %s1184_s10 = smov 128   ;;  %s1185_s18 = smov 8  }
  0xe6   : > { %1044 = dma.vmem_to_hbm [thread:$0]  (%p1246_p4), %s806_s29, 4096, %s808_s15, %s792_s30, %s1184_s10, %s1184_s10, %s1185_s18  }
  0xe7 PF: > { %p1050_p6 = scmp.ge.s32.totalorder %s1181_s17, 2  ;;  %s822_s19 = sand.u32 1, %s1161_s12  }
  0xe8   : > { %s823_s21 = scalar_lea.sflag [#allocation4], %s822_s19 }
  0xe9   : > { %p1047_p7 = pnand %p1050_p6, %p1253_p8 }
  0xeb   : > { %p1048_p9 = pneg %p1047_p7 }
  0xed   : > { %1156 = dma.done.wait (%p1048_p9), %s823_s21, 4096  }
  0xee   : > { %1158 = vsyncadd (%p1048_p9), %s823_s21, 4294963200  ;;  %s16_s17 = sadd.s32 1, %s1181_s17   ;;  %s1427_s12 = smov %s1165_s13 }
  0xef   : > { %p13_p10 = scmp.ge.s32.totalorder %s16_s17, 4   ;;  %s1428_s13 = smov %s1169_s14 }
  0xf0   : > { %s1429_s14 = smov %s1259_s25  ;;  %s1430_s15 = smov %s1177_s16 }
  0xf1   : > { %s1431_s16 = smov %s1433_s20  ;;  %15 = sbr.rel (!%p13_p10) target bundleno = 4 (0x4), region = 81 }
  0xf6   :  { %829 = vsyncpa [#allocation4], 1 }
  0xf7   :  { %831 = vsyncpa [#allocation4 + $0x1], 1 }

</bundles_post_ra>
